<compile_context>
chip_gen: v5e
topology: v5e:2x2
jax: 0.10.0
libtpu: 0.0.40
codegen_flags: <defaults>
</compile_context>

<pallas_src>
import jax
import jax.numpy as jnp
from jax.experimental import pallas as pl
from jax.experimental.pallas import tpu as pltpu


def _add_pos_kernel(x_ref, emb_ref, o_ref):
    # x_ref / emb_ref / o_ref: (TR, C) VMEM tiles.  emb is already x.dtype.
    o_ref[...] = x_ref[...] + emb_ref[...]


def _tpu_tuning():
    """(target block bytes, vmem_limit_bytes or None), per TPU generation."""
    try:
        kind = jax.devices()[0].device_kind.lower()
    except Exception:  # pragma: no cover - CPU/interpret fallback
        kind = ""
    if "v7" in kind or "7x" in kind:
        # 6 MiB blocks -> 6x6 = 36 MiB double-buffered, under a 48 MiB limit
        # (64 MiB physical VMEM on v7x).
        return 6 * 1024 * 1024, 48 * 1024 * 1024
    if "v6" in kind:
        # 4 MiB blocks -> 24 MiB footprint, fits the 32 MiB scoped default.
        return 4 * 1024 * 1024, None
    # v5e / unknown: 2 MiB blocks -> 12 MiB footprint, fits 16 MiB default.
    return 2 * 1024 * 1024, None


def _compiler_params(n_parallel_axes, vmem_limit):
    kwargs = dict(dimension_semantics=("parallel",) * n_parallel_axes)
    if vmem_limit is not None:
        kwargs["vmem_limit_bytes"] = vmem_limit
    return pltpu.CompilerParams(**kwargs)


def _pick_row_tile(rows, cols, itemsize, target_bytes):
    """Pick a row tile:
      - full `rows` if the whole slab is small,
      - else a multiple of the dtype's sublane packing (8 f32 / 16 bf16 / 32 i8)
        sized so one block is ~target_bytes."""
    row_bytes = cols * itemsize
    if rows * row_bytes <= target_bytes:
        return rows
    sub = max(8, 32 // itemsize)
    tr = (target_bytes // row_bytes) // sub * sub
    tr = max(sub, tr)
    return min(tr, rows)


def _lane_fold_cols(rows, cols):
    """Column width C (multiple of 128 dividing rows*cols) for folding rows
    into the lane axis, or None if the native layout is already fine / the
    fold is impossible."""
    if cols % 128 == 0:
        return None                      # already lane-dense
    total = rows * cols
    if total % 128 != 0:
        return None                      # cannot make a lane-dense view
    for cand in (1024, 512, 384, 256, 128):
        if total % cand == 0:
            return cand
    return None


def _add_pos_3d(x, emb_slice, row_tile=None, donate=False):
    """x: (B, L, D), emb_slice: (L, D) -> x + emb_slice[None]."""
    B, L, D = x.shape
    emb_slice = emb_slice.astype(x.dtype)          # cast once, outside the kernel
    target_bytes, vmem_limit = _tpu_tuning()
    tr = row_tile if row_tile is not None else _pick_row_tile(
        L, D, x.dtype.itemsize, target_bytes)
    nt = pl.cdiv(L, tr)
    kwargs = {}
    if donate:
        kwargs["input_output_aliases"] = {0: 0}    # in-place add when x donated
    return pl.pallas_call(
        _add_pos_kernel,
        out_shape=jax.ShapeDtypeStruct((B, L, D), x.dtype),
        grid_spec=pl.GridSpec(
            # t outermost, b innermost: emb block index (t, 0) is constant over
            # the inner batch loop, so its DMA is elided after the first fetch.
            grid=(nt, B),
            in_specs=[
                pl.BlockSpec((None, tr, D), lambda t, b: (b, t, 0)),  # x
                pl.BlockSpec((tr, D), lambda t, b: (t, 0)),           # emb
            ],
            out_specs=pl.BlockSpec((None, tr, D), lambda t, b: (b, t, 0)),
        ),
        compiler_params=_compiler_params(2, vmem_limit),
        **kwargs,
    )(x, emb_slice)


def _add_pos_4d_native(x, emb_hrc, row_tile, donate):
    """x: (B, H, R, C), emb_hrc: (H, R, C) -> x + emb_hrc[None]."""
    B, H, R, C = x.shape
    target_bytes, vmem_limit = _tpu_tuning()
    tr = row_tile if row_tile is not None else _pick_row_tile(
        R, C, x.dtype.itemsize, target_bytes)
    nt = pl.cdiv(R, tr)
    kwargs = {}
    if donate:
        kwargs["input_output_aliases"] = {0: 0}
    return pl.pallas_call(
        _add_pos_kernel,
        out_shape=jax.ShapeDtypeStruct((B, H, R, C), x.dtype),
        grid_spec=pl.GridSpec(
            grid=(nt, H, B),  # b innermost -> emb block (h, t, 0) re-DMA elided
            in_specs=[
                pl.BlockSpec((None, None, tr, C), lambda t, h, b: (b, h, t, 0)),  # x
                pl.BlockSpec((None, tr, C), lambda t, h, b: (h, t, 0)),           # emb
            ],
            out_specs=pl.BlockSpec((None, None, tr, C), lambda t, h, b: (b, h, t, 0)),
        ),
        compiler_params=_compiler_params(3, vmem_limit),
        **kwargs,
    )(x, emb_hrc)


def _add_pos_4d(x, emb_hld, row_tile=None, donate=False):
    """x: (B, H, L, d), emb_hld: (H, L, d) -> x + emb_hld[None] (native layout,
    with an optional free lane-fold when d is not a multiple of 128)."""
    B, H, L, d = x.shape
    emb_hld = emb_hld.astype(x.dtype)
    C = _lane_fold_cols(L, d)
    if C is not None and row_tile is None:
        # Contiguous view: (B,H,L,d) -> (B,H,L*d/C,C); same elements, same
        # order, so the broadcast add is unchanged.  emb folded identically.
        R = (L * d) // C
        out = _add_pos_4d_native(x.reshape(B, H, R, C),
                                 emb_hld.reshape(H, R, C), None, donate)
        return out.reshape(B, H, L, d)
    return _add_pos_4d_native(x, emb_hld, row_tile, donate)


class LearnableAbsolutePositionEmbedding:
    """JAX/Pallas port of the PyTorch module (deterministic init)."""

    def __init__(self, max_position_embeddings, hidden_size, dtype=jnp.float32):
        self.max_position_embeddings = max_position_embeddings
        self.hidden_size = hidden_size
        self.is_absolute = True
        key = jax.random.PRNGKey(0)
        self.embeddings = jax.random.normal(
            key, (max_position_embeddings, hidden_size), dtype=dtype)
        self.position_ids = jnp.arange(max_position_embeddings)
        self._emb_cache = {}

    def _cached_emb(self, l, h, d, dtype):
        """Pre-sliced (+ pre-transposed for 4D) + pre-cast table, cached so the
        wrapper is a pure pallas_call on repeat forward calls."""
        key = (l, h, d, jnp.dtype(dtype).name)
        cached = self._emb_cache.get(key)
        if cached is None:
            emb = self.embeddings[:l]
            if h is not None:
                emb = jnp.transpose(emb.reshape(l, h, d), (1, 0, 2))
            cached = emb.astype(dtype)
            self._emb_cache[key] = cached
        return cached

    def __call__(self, x, donate=False):
        if x.ndim == 3:
            b, l, d = x.shape
            assert d == self.hidden_size
            return _add_pos_3d(x, self._cached_emb(l, None, None, x.dtype),
                               donate=donate)
        elif x.ndim == 4:
            b, h, l, d = x.shape
            assert h * d == self.hidden_size
            return _add_pos_4d(x, self._cached_emb(l, h, d, x.dtype),
                               donate=donate)
        else:
            raise ValueError("expected 3D or 4D input")


if __name__ == "__main__":
    key = jax.random.PRNGKey(0)
    k3, k4, k5, k6 = jax.random.split(key, 4)

    max_pos, hidden = 16, 32
    module = LearnableAbsolutePositionEmbedding(max_pos, hidden)

    def ref_4d(x, emb):
        b, h, l, d = x.shape
        x_flat = jnp.transpose(x, (0, 2, 1, 3)).reshape(b, l, h * d)
        y = x_flat + emb[:l][None, :, :]
        return jnp.transpose(y.reshape(b, l, h, d), (0, 2, 1, 3))

    # --- 3D case: (b, l, d) = (2, 8, 32) ---
    x3 = jax.random.normal(k3, (2, 8, 32), dtype=jnp.float32)
    out3 = jax.block_until_ready(module(x3))
    ref3 = x3 + module.embeddings[:8][None, :, :]
    assert out3.shape == x3.shape
    assert jnp.allclose(out3, ref3, atol=1e-6), "3D mismatch"

    # --- 3D, multi-tile grid path: (b, l, d) = (2, 16, 32), row_tile=8 ---
    x3b = jax.random.normal(k5, (2, 16, 32), dtype=jnp.float32)
    out3b = jax.block_until_ready(_add_pos_3d(x3b, module.embeddings[:16], row_tile=8))
    ref3b = x3b + module.embeddings[:16][None, :, :]
    assert jnp.allclose(out3b, ref3b, atol=1e-6), "3D tiled mismatch"

    # --- 4D case, native layout (L*d not a multiple of 128): (2, 4, 8, 8) ---
    x4 = jax.random.normal(k4, (2, 4, 8, 8), dtype=jnp.float32)
    out4 = jax.block_until_ready(module(x4))
    assert out4.shape == x4.shape
    assert jnp.allclose(out4, ref_4d(x4, module.embeddings), atol=1e-6), "4D mismatch"

    # --- 4D case, lane-folded path (L*d = 128): (2, 4, 16, 8) ---
    x4b = jax.random.normal(k6, (2, 4, 16, 8), dtype=jnp.float32)
    out4b = jax.block_until_ready(module(x4b))
    assert out4b.shape == x4b.shape
    assert jnp.allclose(out4b, ref_4d(x4b, module.embeddings), atol=1e-6), \
        "4D lane-folded mismatch"

    # --- bf16 input: emb pre-cast in the wrapper, output follows x.dtype ---
    x3h = x3.astype(jnp.bfloat16)
    out3h = jax.block_until_ready(module(x3h))
    ref3h = x3h + module.embeddings[:8][None, :, :].astype(jnp.bfloat16)
    assert out3h.dtype == jnp.bfloat16
    assert jnp.allclose(out3h.astype(jnp.float32), ref3h.astype(jnp.float32),
                        atol=1e-2), "bf16 mismatch"

    print("KERNEL_OK")
</pallas_src>

<mosaic_0001>
module attributes {stable_mosaic.version = 11 : i64} {
  func.func @_add_pos_kernel(%arg0: i32, %arg1: i32, %arg2: memref<1x8x32xf32, #tpu.memory_space<vmem>>, %arg3: memref<8x32xf32, #tpu.memory_space<vmem>>, %arg4: memref<1x8x32xf32, #tpu.memory_space<vmem>>) attributes {dimension_semantics = [#tpu.dimension_semantics<parallel>, #tpu.dimension_semantics<parallel>], iteration_bounds = array<i64: 1, 2>, scalar_prefetch = 0 : i64, scratch_operands = 0 : i64, tpu.core_type = #tpu.core_type<tc>, window_params = [{transform_indices = @transform_0, window_bounds = array<i64: 1, 8, 32>}, {transform_indices = @transform_1, window_bounds = array<i64: 8, 32>}, {transform_indices = @transform_2, window_bounds = array<i64: 1, 8, 32>}]} {
    %c0 = arith.constant 0 : index
    %c0_0 = arith.constant 0 : index
    %c0_1 = arith.constant 0 : index
    %0 = vector.load %arg2[%c0, %c0_0, %c0_1] : memref<1x8x32xf32, #tpu.memory_space<vmem>>, vector<1x8x32xf32>
    %1 = vector.shape_cast %0 : vector<1x8x32xf32> to vector<8x32xf32>
    %c0_2 = arith.constant 0 : index
    %c0_3 = arith.constant 0 : index
    %2 = vector.load %arg3[%c0_2, %c0_3] : memref<8x32xf32, #tpu.memory_space<vmem>>, vector<8x32xf32>
    %3 = arith.addf %1, %2 : vector<8x32xf32>
    %c0_4 = arith.constant 0 : index
    %c0_5 = arith.constant 0 : index
    %c0_6 = arith.constant 0 : index
    %4 = vector.load %arg4[%c0_4, %c0_5, %c0_6] : memref<1x8x32xf32, #tpu.memory_space<vmem>>, vector<1x8x32xf32>
    %5 = vector.shape_cast %4 : vector<1x8x32xf32> to vector<8x32xf32>
    %6 = vector.shape_cast %3 : vector<8x32xf32> to vector<1x8x32xf32>
    tpu.vector_store %arg4[%c0_4, %c0_5, %c0_6], %6 {strides = array<i32>} : memref<1x8x32xf32, #tpu.memory_space<vmem>>, vector<1x8x32xf32>,
    return
  }
  func.func @transform_0(%arg0: i32, %arg1: i32) -> (i32, i32, i32) {
    %c0_i32 = arith.constant 0 : i32
    %c0_i32_0 = arith.constant 0 : i32
    return %arg1, %arg0, %c0_i32 : i32, i32, i32
  }
  func.func @transform_1(%arg0: i32, %arg1: i32) -> (i32, i32) {
    %c0_i32 = arith.constant 0 : i32
    %c0_i32_0 = arith.constant 0 : i32
    return %arg0, %c0_i32 : i32, i32
  }
  func.func @transform_2(%arg0: i32, %arg1: i32) -> (i32, i32, i32) {
    %c0_i32 = arith.constant 0 : i32
    %c0_i32_0 = arith.constant 0 : i32
    return %arg1, %arg0, %c0_i32 : i32, i32, i32
  }
}

</mosaic_0001>

<bundles_post_ra>
// kernel: tpu_custom_call.1
= control target key start
LH: loop header
LB: loop body
LE: loop exit
PB: predicated region body
PF: predicated region fallthrough
CT: control target
= control target key end

     0   :  { %7 = vsyncpa [#allocation3], 0  ;;  %s715_s0 = inlined_call_operand.hbm [shape: f32[2,8,32], index: 0, kind: input, shape index: {}]   ;;  %s716_s1 = inlined_call_operand.hbm [shape: f32[8,32], index: 1, kind: input, shape index: {}]   ;;  %s717_s2 = inlined_call_operand.hbm [shape: f32[2,8,32], index: 2, kind: output, shape index: {}]  }
   0x1   :  { %9 = vsyncpa [#allocation3 + $0x1], 0 }
   0x2   :  { %10 = vsyncpa [#allocation6], 0 }
   0x3   :  { %11 = vsyncpa [#allocation4], 0 }
   0x4   :  { %13 = vsyncpa [#allocation4 + $0x1], 0  ;;  %s566_s9 = smov 0   ;;  %s568_s10 = smov 0  }
   0x5   :  { %s570_s11 = smov 0   ;;  %s572_s12 = smov 0  }
   0x6   :  { %s574_s13 = smov 0   ;;  %s576_s14 = smov 0  }
   0x7 LB: > { %s314_s15 = sadd.s32 4294967295, %s548_s14   ;;  %s315_s16 = sadd.s32 4294967294, %s548_s14   ;;  %s548_s14 = sphi %s576_s14, %s19_s14   ;;  %s544_s13 = sphi %s574_s13, %s729_s13   ;;  %s540_s12 = sphi %s572_s12, %s728_s12   ;;  %s536_s11 = sphi %s570_s11, %s727_s11   ;;  %s532_s10 = sphi %s568_s10, %s726_s10   ;;  %s528_s9 = sphi %s566_s9, %s725_s9  }
   0x8   : > { %p53_p0 = scmp.ne.s32.totalorder %s532_s10, %s528_s9  ;;  %p600_p1 = scmp.eq.s32.totalorder %s314_s15, 0 }
   0x9   : > { %p604_p2 = scmp.eq.s32.totalorder %s314_s15, 1  ;;  %p111_p3 = scmp.eq.s32.totalorder %s315_s16, 1 }
   0xa   : > { %p610_p4 = por %p600_p1, %p53_p0  ;;  %p316_p5 = scmp.ge.s32.totalorder %s548_s14, 1 }
   0xb   : > { %p615_p6 = por %p111_p3, %p53_p0  ;;  %p118_p7 = scmp.lt.s32.totalorder %s548_s14, 3 }
   0xc   : > { %s132_s23 = sshll.u32 %s716_s1, 4  ;;  %p318_p9 = scmp.ge.s32.totalorder %s548_s14, 2  ;;  %s133_s23 = int_to_ptr.hbm [resolvable:$true] %s132_s23 }
   0xd   : > { %p623_p8 = pnand %p316_p5, %p118_p7  ;;  %s550_s25 = smov [#allocation5]  }
   0xe   : > { %s134_s26 = sshll.u32 %s550_s25, 4  ;;  %s28_s27 = sadd.s32 1, %s544_s13  ;;  %s135_s26 = int_to_ptr.vmem [resolvable:$true] %s134_s26 }
   0xf   : > { %p337_p10 = pneg %p623_p8  ;;  %p29_p12 = scmp.ge.s32.totalorder %s28_s27, 2 }
  0x10   : > { %s40_s28 = sadd.s32 1, %s536_s11  ;;  %p47_p13 = scmp.ne.s32.totalorder %s536_s11, %s532_s10 }
  0x11   : > { %p338_p11 = pnand %p337_p10, %p600_p1  ;;  %p48_p0 = scmp.eq.s32.totalorder %s548_s14, 0 }
  0x12   : > { %s731_s27 = smov (%p29_p12, %s28_s27), 0  ;;  %p645_p5 = por %p604_p2, %p47_p13 }
  0x13   : > { %340 = dma.hbm_to_vmem [thread:$0]  (!%p338_p11), %s133_s23, 128, %s135_s26, [#allocation6]  }
  0x14   : > { %p639_p3 = por %p48_p0, %p47_p13  ;;  %s35_s3 = ssub.s32 %s544_s13, %s731_s27 }
  0x15   : > { %p350_p7 = scmp.lt.s32.totalorder %s548_s14, 2  ;;  %p38_p10 = scmp.eq.s32.totalorder %s35_s3, 0 }
  0x16   : > { %s145_s4 = sand.u32 1, %s536_s11   ;;  %s320_s7 = sshll.u32 %s544_s13, 3 }
  0x17   : > { %s319_s5 = sshll.u32 %s145_s4, 3  ;;  %s154_s16 = scalar_lea.hbm %s715_s0, %s320_s7 }
  0x18   : > { %s654_s6 = scalar_select %p38_p10, %s536_s11, %s40_s28  }
  0x19   : > { %s149_s21 = scalar_lea.vmem [#allocation2], %s319_s5  ;;  %s156_s18 = sshll.u32 %s154_s16, 4  ;;  %s157_s18 = int_to_ptr.hbm [resolvable:$true] %s156_s18 }
  0x1a   : > { %s158_s22 = sshll.u32 %s149_s21, 4  ;;  %p342_p2 = pnand %p350_p7, %p639_p3  ;;  %s159_s22 = int_to_ptr.vmem [resolvable:$true] %s158_s22 }
  0x1b   : > { %s146_s23 = scalar_lea.sflag [#allocation3], %s145_s4  ;;  %167 = sbr.rel (%p623_p8) target bundleno = 50 (0x32), region = 28 }
  0x1c   : > { %344 = dma.hbm_to_vmem [thread:$0]  (!%p342_p2), %s157_s18, 128, %s159_s22, %s146_s23  }
  0x1d   : > { %s665_s25 = sand.u32 (!%p623_p8), 1, %s532_s10  }
  0x1e   : > { %s322_s26 = sshll.u32 (!%p623_p8), %s665_s25, 3  ;;  %s170_s28 = scalar_lea.sflag (!%p623_p8), [#allocation3], %s665_s25 }
  0x1f   : > { %s173_s3 = scalar_lea.vmem (!%p623_p8), [#allocation2], %s322_s26 }
  0x20   : > { %515 = dma.done.wait (%p610_p4), %s170_s28, 128  }
  0x21   : > { %517 = vsyncadd (%p610_p4), %s170_s28, 4294967168 }
  0x22   : > { %519 = dma.done.wait (%p600_p1), [#allocation6], 128  }
  0x23   : > { %521 = vsyncadd (%p600_p1), [#allocation6], 4294967168  ;;  %s326_s24 = sshll.u32 %s540_s12, 3  ;;  %s199_s7 = scalar_lea.vmem [#allocation7], %s322_s26  ;;  %v200_v0 = vld [vmem:[%s173_s3] sm:$0xff]  ;;  %v201_v1 = vld [vmem:[#allocation5] sm:$0xff] }
  0x24   : > { %s217_s5 = scalar_lea.hbm %s717_s2, %s326_s24  ;;  %s219_s8 = sshll.u32 %s199_s7, 4  ;;  %vm203_vm0 = vcmask 261120   ;;  %v202_v2 = vadd.f32 %v201_v1, %v200_v0  ;;  %s220_s8 = int_to_ptr.vmem [resolvable:$true] %s219_s8 }
  0x25   : > { %s221_s15 = sshll.u32 %s217_s5, 4  ;;  %s206_s17 = scalar_lea.sflag [#allocation4], %s665_s25  ;;  %s222_s15 = int_to_ptr.hbm [resolvable:$true] %s221_s15 }
  0x26   : > { %204 = vst.msk [vmem:[%s199_s7] sm:$0xff] %vm203_vm0, %v202_v2  ;;  %s476_s19 = sshra.s32 %s222_s15, 4  ;;  %s482_s22 = scalar_lea.hbm %s717_s2, 16  ;;  %s477_s19 = int_to_ptr.hbm [resolvable:$true] %s476_s19 }
  0x27   : > { %s478_s16 = scalar_lea.hbm %s477_s19, 8  ;;  %p483_p11 = scmp.lt.s32.totalorder %s477_s19, %s717_s2 }
  0x28   : > { %p479_p1 = scmp.ne.s32.totalorder %s477_s19, %s478_s16  ;;  %p484_p12 = scmp.lt.s32.totalorder %s482_s22, %s478_s16 }
  0x2a   : > { %p480_p4 = pnand %p479_p1, %p645_p5  ;;  %p485_p13 = por %p484_p12, %p483_p11 }
  0x2c   : > { %p481_p8 = pneg %p480_p4 }
  0x2e   : > { %p486_p0 = pnand %p485_p13, %p481_p8 }
  0x30   : > { %489 = shalt.err (!%p486_p0)
}
  0x31   : > { %335 = dma.vmem_to_hbm [thread:$0]  (%p645_p5), %s220_s8, 128, %s222_s15, %s206_s17  }
  0x32 PF: > { %s233_s25 = sand.u32 1, %s528_s9   ;;  %p346_p3 = pnand %p318_p9, %p615_p6 }
  0x33   : > { %s234_s26 = scalar_lea.sflag [#allocation4], %s233_s25 }
  0x34   : > { %p347_p7 = pneg %p346_p3 }
  0x36   : > { %523 = dma.done.wait (%p347_p7), %s234_s26, 128  }
  0x37   : > { %525 = vsyncadd (%p347_p7), %s234_s26, 4294967168  ;;  %s19_s14 = sadd.s32 1, %s548_s14   ;;  %s725_s9 = smov %s532_s10 }
  0x38   : > { %p16_p10 = scmp.ge.s32.totalorder %s19_s14, 4   ;;  %s726_s10 = smov %s536_s11 }
  0x39   : > { %s727_s11 = smov %s654_s6  ;;  %s728_s12 = smov %s544_s13 }
  0x3a   : > { %s729_s13 = smov %s731_s27  ;;  %18 = sbr.rel (!%p16_p10) target bundleno = 7 (0x7), region = 78 }
  0x3f   :  { %240 = vsyncpa [#allocation3], 1 }
  0x40   :  { %242 = vsyncpa [#allocation3 + $0x1], 1 }
  0x41   :  { %243 = vsyncpa [#allocation6], 1 }
  0x42   :  { %244 = vsyncpa [#allocation4], 1 }
  0x43   :  { %246 = vsyncpa [#allocation4 + $0x1], 1 }

</bundles_post_ra>
